<compile_context>
chip_gen: v7x
topology: tpu7x:2x2x1
jax: 0.10.0
libtpu: 0.0.40
codegen_flags: <defaults>
</compile_context>

<pallas_src>
import jax
import jax.numpy as jnp
from jax.experimental import pallas as pl
from jax.experimental.pallas import tpu as pltpu

STATE_DIM = 4      # CartPole-v1 observation_space.shape[0]
HIDDEN_DIM = 256
ACTION_DIM = 2     # CartPole-v1 action_space.n


def _actor_kernel(xT_ref, w1T_ref, b1_ref, w2d_ref, b2d_ref, out_ref):
    # xT_ref : (STATE_DIM, TB)   batch on lanes
    # w1T_ref: (HIDDEN_DIM, STATE_DIM)
    # b1_ref : (HIDDEN_DIM, 1)
    # w2d_ref: (1, HIDDEN_DIM)   w2[:,0] - w2[:,1]
    # b2d_ref: (1, 1) in SMEM    b2[0]   - b2[1]
    # out_ref: (ACTION_DIM, TB)  lane-dense output

    # ---- Layer 1 on the MXU: (256,4) @ (4,TB) -> (256,TB), then bias + ReLU
    #      on the VPU (overlaps with the MXU drain).
    hT = jnp.dot(w1T_ref[...], xT_ref[...], preferred_element_type=jnp.float32)
    hT = jnp.maximum(hT + b1_ref[...], 0.0)

    # ---- Layer 2 + softmax collapsed (exact for 2 actions):
    #      d  = (x W2 + b2)[:,0] - (x W2 + b2)[:,1]
    #      p0 = sigmoid(d), p1 = 1 - p0
    d = jnp.dot(w2d_ref[...], hT, preferred_element_type=jnp.float32)  # (1, TB)
    d = d + b2d_ref[0, 0]
    # exp -> EUP, approx reciprocal -> EUP; both off the VALU slots.
    # Overflow of exp(-d) -> inf -> p0 == 0 is the correct softmax limit.
    p0 = pl.reciprocal(1.0 + jnp.exp(-d), approx=True)                 # (1, TB)
    out_ref[...] = jnp.concatenate([p0, 1.0 - p0], axis=0)             # (2, TB)


def _choose_tiling(B, block_b):
    """Bucketed padded batch (power of two, >=128 lanes) and lane tile size."""
    bp = max(128, int(pl.next_power_of_2(max(int(B), 1))))
    if bp < 256:
        tb = bp                       # single tile; batch too small to split
    else:
        # >=2 grid steps so dimension_semantics=("parallel",) actually shards
        # the batch across both v7x TensorCores; cap the tile at block_b.
        tb = min(block_b, bp // 2)
    return tb, bp


def actor_forward(state, w1, b1, w2, b2, *, block_b=4096):
    """Actor forward pass (softmax action probabilities) as one Pallas call.

    Args:
      state: (B, STATE_DIM) float32
      w1: (STATE_DIM, HIDDEN_DIM), b1: (1, HIDDEN_DIM)
      w2: (HIDDEN_DIM, ACTION_DIM), b2: (1, ACTION_DIM)
    Returns:
      (B, ACTION_DIM) float32 action probabilities (rows sum to 1).
    """
    B = state.shape[0]

    # Transposed (lane-dense) parameter views + folded layer-2 difference.
    w1T = jnp.asarray(w1, jnp.float32).T                                # (H, S)
    b1c = jnp.asarray(b1, jnp.float32).reshape(HIDDEN_DIM, 1)           # (H, 1)
    w2d = (w2[:, 0] - w2[:, 1]).reshape(1, HIDDEN_DIM).astype(jnp.float32)
    b2d = (b2[:, 0] - b2[:, 1]).reshape(1, 1).astype(jnp.float32)

    # Batch-on-lanes input layout.
    xT = jnp.asarray(state, jnp.float32).T                              # (S, B)

    tb, bp = _choose_tiling(B, block_b)
    if bp != B:
        xT = jnp.pad(xT, ((0, 0), (0, bp - B)))

    out = pl.pallas_call(
        _actor_kernel,
        out_shape=jax.ShapeDtypeStruct((ACTION_DIM, bp), jnp.float32),
        grid=(bp // tb,),
        in_specs=[
            pl.BlockSpec((STATE_DIM, tb), lambda i: (0, i)),            # xT: blocked on lanes
            pl.BlockSpec((HIDDEN_DIM, STATE_DIM), lambda i: (0, 0)),    # w1T: VMEM-resident
            pl.BlockSpec((HIDDEN_DIM, 1), lambda i: (0, 0)),            # b1 column
            pl.BlockSpec((1, HIDDEN_DIM), lambda i: (0, 0)),            # w2 diff row
            pl.BlockSpec(memory_space=pltpu.MemorySpace.SMEM),          # b2 diff scalar
        ],
        out_specs=pl.BlockSpec((ACTION_DIM, tb), lambda i: (0, i)),     # lane-dense output
        compiler_params=pltpu.CompilerParams(
            dimension_semantics=("parallel",)),
    )(xT, w1T, b1c, w2d, b2d)

    # TODO(synk): callers needing log-probs for the PG loss should consume the
    # logit difference d directly instead of log(prob) (avoids -inf at |d|>~88).
    return out[:, :B].T                                                 # (B, 2)


def init_params(key):
    """Deterministic init mimicking nn.Linear's uniform(-1/sqrt(fan_in))."""
    k1, k2, k3, k4 = jax.random.split(key, 4)
    lim1 = 1.0 / jnp.sqrt(STATE_DIM)
    lim2 = 1.0 / jnp.sqrt(HIDDEN_DIM)
    w1 = jax.random.uniform(k1, (STATE_DIM, HIDDEN_DIM), jnp.float32, -lim1, lim1)
    b1 = jax.random.uniform(k2, (1, HIDDEN_DIM), jnp.float32, -lim1, lim1)
    w2 = jax.random.uniform(k3, (HIDDEN_DIM, ACTION_DIM), jnp.float32, -lim2, lim2)
    b2 = jax.random.uniform(k4, (1, ACTION_DIM), jnp.float32, -lim2, lim2)
    return w1, b1, w2, b2


def actor_forward_ref(state, w1, b1, w2, b2):
    """Pure-JAX reference for correctness checking."""
    h = jnp.maximum(state @ w1 + b1, 0.0)
    logits = h @ w2 + b2
    return jax.nn.softmax(logits, axis=-1)


if __name__ == "__main__":
    key = jax.random.PRNGKey(0)
    pkey, skey = jax.random.split(key)
    w1, b1, w2, b2 = init_params(pkey)

    batch = 8
    state = jax.random.normal(skey, (batch, STATE_DIM), jnp.float32)

    probs = jax.block_until_ready(actor_forward(state, w1, b1, w2, b2))
    ref = actor_forward_ref(state, w1, b1, w2, b2)
    assert probs.shape == (batch, ACTION_DIM)
    # Tolerance covers the EUP approx-reciprocal sigmoid (~1e-4 rel error).
    assert jnp.allclose(probs, ref, atol=2e-3, rtol=2e-3), "mismatch vs reference"
    assert jnp.allclose(jnp.sum(probs, axis=-1), 1.0, atol=1e-5), "rows must sum to 1"

    # Exercise the bucketed-padding + multi-step parallel grid path.
    big_state = jax.random.normal(jax.random.PRNGKey(1), (1000, STATE_DIM), jnp.float32)
    big_probs = jax.block_until_ready(actor_forward(big_state, w1, b1, w2, b2))
    big_ref = actor_forward_ref(big_state, w1, b1, w2, b2)
    assert big_probs.shape == (1000, ACTION_DIM)
    assert jnp.allclose(big_probs, big_ref, atol=2e-3, rtol=2e-3), "mismatch (large batch)"

    print("KERNEL_OK")
</pallas_src>

<mosaic_0001>
module attributes {stable_mosaic.version = 11 : i64} {
  func.func @_actor_kernel(%arg0: i32, %arg1: memref<4x128xf32, #tpu.memory_space<vmem>>, %arg2: memref<256x4xf32, #tpu.memory_space<vmem>>, %arg3: memref<256x1xf32, #tpu.memory_space<vmem>>, %arg4: memref<1x256xf32, #tpu.memory_space<vmem>>, %arg5: memref<1x1xf32, #tpu.memory_space<smem>>, %arg6: memref<2x128xf32, #tpu.memory_space<vmem>>) attributes {dimension_semantics = [#tpu.dimension_semantics<parallel>], iteration_bounds = array<i64: 1>, scalar_prefetch = 0 : i64, scratch_operands = 0 : i64, tpu.core_type = #tpu.core_type<tc>, window_params = [{transform_indices = @transform_0, window_bounds = array<i64: 4, 128>}, {pipeline_mode = #tpu.pipeline_mode<synchronous>, transform_indices = @transform_1, window_bounds = array<i64: 256, 4>}, {pipeline_mode = #tpu.pipeline_mode<synchronous>, transform_indices = @transform_2, window_bounds = array<i64: 256, 1>}, {pipeline_mode = #tpu.pipeline_mode<synchronous>, transform_indices = @transform_3, window_bounds = array<i64: 1, 256>}, {transform_indices = @transform_4, window_bounds = array<i64: 1, 1>}, {transform_indices = @transform_5, window_bounds = array<i64: 2, 128>}]} {
    %c0 = arith.constant 0 : index
    %c0_0 = arith.constant 0 : index
    %0 = vector.load %arg2[%c0, %c0_0] : memref<256x4xf32, #tpu.memory_space<vmem>>, vector<256x4xf32>
    %c0_1 = arith.constant 0 : index
    %c0_2 = arith.constant 0 : index
    %1 = vector.load %arg1[%c0_1, %c0_2] : memref<4x128xf32, #tpu.memory_space<vmem>>, vector<4x128xf32>
    %cst = arith.constant dense<0.000000e+00> : vector<256x128xf32>
    %2 = tpu.matmul %0, %1, %cst {dimension_numbers = #tpu.dot_dimension_numbers<[1], [0], [0], [1], [0, 0, 1, 1], [], []>} : vector<256x4xf32>, vector<4x128xf32>, vector<256x128xf32> -> vector<256x128xf32>
    %c0_3 = arith.constant 0 : index
    %c0_4 = arith.constant 0 : index
    %3 = vector.load %arg3[%c0_3, %c0_4] : memref<256x1xf32, #tpu.memory_space<vmem>>, vector<256x1xf32>
    %4 = vector.broadcast %3 : vector<256x1xf32> to vector<256x128xf32>
    %5 = arith.addf %2, %4 : vector<256x128xf32>
    %cst_5 = arith.constant 0.000000e+00 : f32
    %6 = vector.broadcast %cst_5 : f32 to vector<256x128xf32>
    %7 = arith.maximumf %5, %6 : vector<256x128xf32>
    %c0_6 = arith.constant 0 : index
    %c0_7 = arith.constant 0 : index
    %8 = vector.load %arg4[%c0_6, %c0_7] : memref<1x256xf32, #tpu.memory_space<vmem>>, vector<1x256xf32>
    %cst_8 = arith.constant dense<0.000000e+00> : vector<1x128xf32>
    %9 = tpu.matmul %8, %7, %cst_8 {dimension_numbers = #tpu.dot_dimension_numbers<[1], [0], [0], [1], [0, 0, 1, 1], [], []>} : vector<1x256xf32>, vector<256x128xf32>, vector<1x128xf32> -> vector<1x128xf32>
    %c0_9 = arith.constant 0 : index
    %c0_10 = arith.constant 0 : index
    %10 = memref.load %arg5[%c0_9, %c0_10] : memref<1x1xf32, #tpu.memory_space<smem>>
    %11 = vector.broadcast %10 : f32 to vector<1x128xf32>
    %12 = arith.addf %9, %11 : vector<1x128xf32>
    %cst_11 = arith.constant 0.000000e+00 : f32
    %13 = vector.broadcast %cst_11 : f32 to vector<1x128xf32>
    %14 = arith.subf %13, %12 : vector<1x128xf32>
    %15 = math.exp %14 : vector<1x128xf32>
    %cst_12 = arith.constant 1.000000e+00 : f32
    %16 = vector.broadcast %cst_12 : f32 to vector<1x128xf32>
    %17 = arith.addf %16, %15 : vector<1x128xf32>
    %18 = tpu.reciprocal %17 {approx = true} : vector<1x128xf32> -> vector<1x128xf32>
    %cst_13 = arith.constant 1.000000e+00 : f32
    %19 = vector.broadcast %cst_13 : f32 to vector<1x128xf32>
    %20 = arith.subf %19, %18 : vector<1x128xf32>
    %21 = tpu.concatenate %18, %20 in 0 : vector<1x128xf32>, vector<1x128xf32> -> vector<2x128xf32>
    %c0_14 = arith.constant 0 : index
    %c0_15 = arith.constant 0 : index
    %22 = vector.load %arg6[%c0_14, %c0_15] : memref<2x128xf32, #tpu.memory_space<vmem>>, vector<2x128xf32>
    tpu.vector_store %arg6[%c0_14, %c0_15], %21 {strides = array<i32>} : memref<2x128xf32, #tpu.memory_space<vmem>>, vector<2x128xf32>,
    return
  }
  func.func @transform_0(%arg0: i32) -> (i32, i32) {
    %c0_i32 = arith.constant 0 : i32
    %c0_i32_0 = arith.constant 0 : i32
    return %c0_i32, %arg0 : i32, i32
  }
  func.func @transform_1(%arg0: i32) -> (i32, i32) {
    %c0_i32 = arith.constant 0 : i32
    %c0_i32_0 = arith.constant 0 : i32
    %c0_i32_1 = arith.constant 0 : i32
    return %c0_i32, %c0_i32_0 : i32, i32
  }
  func.func @transform_2(%arg0: i32) -> (i32, i32) {
    %c0_i32 = arith.constant 0 : i32
    %c0_i32_0 = arith.constant 0 : i32
    %c0_i32_1 = arith.constant 0 : i32
    return %c0_i32, %c0_i32_0 : i32, i32
  }
  func.func @transform_3(%arg0: i32) -> (i32, i32) {
    %c0_i32 = arith.constant 0 : i32
    %c0_i32_0 = arith.constant 0 : i32
    %c0_i32_1 = arith.constant 0 : i32
    return %c0_i32, %c0_i32_0 : i32, i32
  }
  func.func @transform_4(%arg0: i32) -> (i32, i32) {
    %c0_i32 = arith.constant 0 : i32
    %c0_i32_0 = arith.constant 0 : i32
    %c0_i32_1 = arith.constant 0 : i32
    return %c0_i32, %c0_i32_0 : i32, i32
  }
  func.func @transform_5(%arg0: i32) -> (i32, i32) {
    %c0_i32 = arith.constant 0 : i32
    %c0_i32_0 = arith.constant 0 : i32
    return %c0_i32, %arg0 : i32, i32
  }
}

</mosaic_0001>

<bundles_post_ra>
// kernel: tpu_custom_call.1
= control target key start
LH: loop header
LB: loop body
LE: loop exit
PB: predicated region body
PF: predicated region fallthrough
CT: control target
= control target key end

     0   :  { %vm344_vm0 = vcmask 1043456   ;;  %vm247_vm1 = vcmask 31744   ;;  %v930_v4 = vmov 0   ;;  %s1282_s0 = inlined_call_operand.vmem [shape: f32[4,128], index: 0, kind: input, shape index: {}]   ;;  %s1283_s1 = inlined_call_operand.vmem [shape: f32[256,4], index: 1, kind: input, shape index: {}]   ;;  %s1284_s2 = inlined_call_operand.vmem [shape: f32[256,1], index: 2, kind: input, shape index: {}]   ;;  %s1285_s3 = inlined_call_operand.vmem [shape: f32[1,256], index: 3, kind: input, shape index: {}]   ;;  %s1286_s4 = inlined_call_operand.<no memory space> [shape: f32[1,1], index: 4, kind: input, shape index: {}]   ;;  %s1287_s5 = inlined_call_operand.hbm [shape: f32[2,128], index: 5, kind: output, shape index: {}]  }
   0x1   :  { %v54_v0 = vld [vmem:[%s1282_s0] sm:$0xf]  ;;  %v23_v2 = vld [vmem:[%s1283_s1 + $0x8] sm:$0xff]  ;;  %v24_v3 = vld [vmem:[%s1283_s1 + $0x10] sm:$0xff]  ;;  %901 = vset.pattern.permute.xlu1 %v930_v4  ;;  %900 = vset.pattern.permute.xlu0 %v930_v4 }
   0x2   :  { %v22_v1 = vld [vmem:[%s1283_s1] sm:$0xff]  ;;  %816 = vmatprep.subr.msk.mxu0 %vm344_vm0, %v54_v0  ;;  %v25_v5 = vld [vmem:[%s1283_s1 + $0x18] sm:$0xff]  ;;  %v72_v9 = vld [vmem:[%s1284_s2 + $0x88] sm:$0xff] }
   0x3   :  { %818 = vmatprep.mubr.msk.f32.mxu0 %vm247_vm1, %v22_v1  ;;  %817 = vmatpush3.msk.msra.mxu0 %vm344_vm0, %v54_v0  ;;  %v26_v6 = vld [vmem:[%s1283_s1 + $0x20] sm:$0xff]  ;;  %v56_v10 = vld [vmem:[%s1284_s2 + $0x8] sm:$0xff]  ;;  %v28_v12 = vld [vmem:[%s1283_s1 + $0x30] sm:$0xff] }
   0x4   :  { %819 = vmatmul.mubr.msk.f32.vlgmr.msra.gmra.mrb[0].mxu0 %vm247_vm1, %v23_v2  ;;  %v71_v7 = vld [vmem:[%s1284_s2 + $0x80] sm:$0xff]  ;;  %v27_v11 = vld [vmem:[%s1283_s1 + $0x28] sm:$0xff]  ;;  %v73_v13 = vld [vmem:[%s1284_s2 + $0x90] sm:$0xff] }
   0x5   :  { %821 = vmatprep.mubr.msk.f32.mxu0 %vm247_vm1, %v24_v3  ;;  %v55_v8 = vld [vmem:[%s1284_s2] sm:$0xff]  ;;  %169 = vperm.xlu0 %900, %v71_v7   ;;  %v74_v14 = vld [vmem:[%s1284_s2 + $0x98] sm:$0xff]  ;;  %v57_v17 = vld [vmem:[%s1284_s2 + $0x10] sm:$0xff] }
   0x6   :  { %89 = vperm.xlu1 %901, %v55_v8   ;;  %v29_v15 = vld [vmem:[%s1283_s1 + $0x38] sm:$0xff]  ;;  %v30_v16 = vld [vmem:[%s1283_s1 + $0x40] sm:$0xff]  ;;  %v31_v19 = vld [vmem:[%s1283_s1 + $0x48] sm:$0xff] }
   0x7   :  { %v58_v18 = vld [vmem:[%s1284_s2 + $0x18] sm:$0xff]  ;;  %v32_v20 = vld [vmem:[%s1283_s1 + $0x50] sm:$0xff]  ;;  %v75_v21 = vld [vmem:[%s1284_s2 + $0xa0] sm:$0xff] }
   0x8   :  { %822 = vmatmul.mubr.msk.f32.gmra.mrb[2].mxu0 %vm247_vm1, %v25_v5  ;;  %v76_v22 = vld [vmem:[%s1284_s2 + $0xa8] sm:$0xff]  ;;  %v33_v23 = vld [vmem:[%s1283_s1 + $0x58] sm:$0xff]  ;;  %v34_v24 = vld [vmem:[%s1283_s1 + $0x60] sm:$0xff] }
   0x9   :  { %824 = vmatprep.mubr.msk.f32.mxu0 %vm247_vm1, %v26_v6  ;;  %174 = vperm.xlu0 %900, %v72_v9  }
   0xa   :  { %94 = vperm.xlu1 %901, %v56_v10  }
   0xc   :  { %825 = vmatmul.mubr.msk.f32.gmra.mrb[4].mxu0 %vm247_vm1, %v27_v11 }
   0xd   :  { %827 = vmatprep.mubr.msk.f32.mxu0 %vm247_vm1, %v28_v12  ;;  %179 = vperm.xlu0 %900, %v73_v13  }
   0xe   :  { %184 = vperm.xlu1 %901, %v74_v14  }
  0x10   :  { %828 = vmatmul.mubr.msk.f32.gmra.mrb[6].mxu0 %vm247_vm1, %v29_v15 }
  0x11   :  { %830 = vmatprep.mubr.msk.f32.mxu0 %vm247_vm1, %v30_v16  ;;  %99 = vperm.xlu0 %900, %v57_v17  }
  0x12   :  { %104 = vperm.xlu1 %901, %v58_v18  }
  0x14   :  { %831 = vmatmul.mubr.msk.f32.gmra.mrb[8].mxu0 %vm247_vm1, %v31_v19 }
  0x15   :  { %833 = vmatprep.mubr.msk.f32.mxu0 %vm247_vm1, %v32_v20 }
  0x16   :  { %11 = vsyncpa [#allocation4], 0  ;;  %189 = vperm.xlu0 %900, %v75_v21   ;;  %194 = vperm.xlu1 %901, %v76_v22   ;;  %v59_v25 = vld [vmem:[%s1284_s2 + $0x20] sm:$0xff]  ;;  %v60_v26 = vld [vmem:[%s1284_s2 + $0x28] sm:$0xff]  ;;  %v609_v2 = vlaneseq  ;;  %s931_s19 = smov [#allocation3]   ;;  %vm698_vm2 = vcmask 1040384  }
  0x17   :  { %v35_v27 = vld [vmem:[%s1283_s1 + $0x68] sm:$0xff]  ;;  %v36_v28 = vld [vmem:[%s1283_s1 + $0x70] sm:$0xff]  ;;  %v78_v30 = vld [vmem:[%s1284_s2 + $0xb8] sm:$0xff]  ;;  %s707_s20 = sshll.u32 %s931_s19, 4  ;;  %s708_s20 = int_to_ptr.vmem [resolvable:$true] %s707_s20 }
  0x18   :  { %834 = vmatmul.mubr.msk.f32.gmra.mrb[10].mxu0 %vm247_vm1, %v33_v23  ;;  %v77_v29 = vld [vmem:[%s1284_s2 + $0xb0] sm:$0xff]  ;;  %v37_v31 = vld [vmem:[%s1283_s1 + $0x78] sm:$0xff]  ;;  %v38_v32 = vld [vmem:[%s1283_s1 + $0x80] sm:$0xff]  ;;  %v610_v3 = vshrl.u32 %v609_v2, 7  ;;  %s906_s21 = scalar_lea.vmem %s708_s20, 32  ;;  %p911_p1 = scmp.lt.s32.totalorder %s708_s20, %s708_s20 }
  0x19   :  { %836 = vmatprep.mubr.msk.f32.mxu0 %vm247_vm1, %v34_v24  ;;  %v61_v33 = vld [vmem:[%s1284_s2 + $0x30] sm:$0xff]  ;;  %v62_v34 = vld [vmem:[%s1284_s2 + $0x38] sm:$0xff]  ;;  %v39_v35 = vld [vmem:[%s1283_s1 + $0x88] sm:$0xff]  ;;  %p907_p0 = scmp.ne.s32.totalorder %s708_s20, %s906_s21  ;;  %p912_p2 = scmp.lt.s32.totalorder %s906_s21, %s906_s21 }
  0x1a   :  { %109 = vperm.xlu0 %900, %v59_v25   ;;  %114 = vperm.xlu1 %901, %v60_v26   ;;  %v40_v36 = vld [vmem:[%s1283_s1 + $0x90] sm:$0xff]  ;;  %v79_v37 = vld [vmem:[%s1284_s2 + $0xc0] sm:$0xff]  ;;  %v80_v38 = vld [vmem:[%s1284_s2 + $0xc8] sm:$0xff]  ;;  %v615_v6 = vsub.s32 1, %v610_v3  ;;  %v611_v8 = vsub.s32 0, %v610_v3 }
  0x1b   :  { %v41_v39 = vld [vmem:[%s1283_s1 + $0x98] sm:$0xff]  ;;  %v42_v40 = vld [vmem:[%s1283_s1 + $0xa0] sm:$0xff]  ;;  %v64_v42 = vld [vmem:[%s1284_s2 + $0x48] sm:$0xff]  ;;  %p913_p3 = por %p912_p2, %p911_p1 }
  0x1c   :  { %837 = vmatmul.mubr.msk.f32.gmra.mrb[12].mxu0 %vm247_vm1, %v35_v27  ;;  %v63_v41 = vld [vmem:[%s1284_s2 + $0x40] sm:$0xff]  ;;  %v43_v43 = vld [vmem:[%s1283_s1 + $0xa8] sm:$0xff]  ;;  %v44_v44 = vld [vmem:[%s1283_s1 + $0xb0] sm:$0xff] }
  0x1d   :  { %839 = vmatprep.mubr.msk.f32.mxu0 %vm247_vm1, %v36_v28  ;;  %v81_v45 = vld [vmem:[%s1284_s2 + $0xd0] sm:$0xff]  ;;  %v82_v46 = vld [vmem:[%s1284_s2 + $0xd8] sm:$0xff]  ;;  %v46_v48 = vld [vmem:[%s1283_s1 + $0xc0] sm:$0xff]  ;;  %p914_p4 = pnand %p913_p3, %p907_p0 }
  0x1e   :  { %199 = vperm.xlu0 %900, %v77_v29   ;;  %204 = vperm.xlu1 %901, %v78_v30   ;;  %v45_v47 = vld [vmem:[%s1283_s1 + $0xb8] sm:$0xff]  ;;  %v65_v49 = vld [vmem:[%s1284_s2 + $0x50] sm:$0xff]  ;;  %v47_v51 = vld [vmem:[%s1283_s1 + $0xc8] sm:$0xff] }
  0x1f   :  { %v66_v50 = vld [vmem:[%s1284_s2 + $0x58] sm:$0xff]  ;;  %v48_v52 = vld [vmem:[%s1283_s1 + $0xd0] sm:$0xff]  ;;  %v83_v53 = vld [vmem:[%s1284_s2 + $0xe0] sm:$0xff] }
  0x20   :  { %840 = vmatmul.mubr.msk.f32.gmra.mrb[14].mxu0 %vm247_vm1, %v37_v31  ;;  %v84_v54 = vld [vmem:[%s1284_s2 + $0xe8] sm:$0xff]  ;;  %v49_v55 = vld [vmem:[%s1283_s1 + $0xd8] sm:$0xff]  ;;  %v50_v56 = vld [vmem:[%s1283_s1 + $0xe0] sm:$0xff] }
  0x21   :  { %842 = vmatprep.mubr.msk.f32.mxu0 %vm247_vm1, %v38_v32  ;;  %v67_v57 = vld [vmem:[%s1284_s2 + $0x60] sm:$0xff]  ;;  %v68_v58 = vld [vmem:[%s1284_s2 + $0x68] sm:$0xff]  ;;  %v52_v60 = vld [vmem:[%s1283_s1 + $0xf0] sm:$0xff] }
  0x22   :  { %119 = vperm.xlu0 %900, %v61_v33   ;;  %124 = vperm.xlu1 %901, %v62_v34   ;;  %v51_v59 = vld [vmem:[%s1283_s1 + $0xe8] sm:$0xff]  ;;  %v85_v61 = vld [vmem:[%s1284_s2 + $0xf0] sm:$0xff]  ;;  %v86_v62 = vld [vmem:[%s1284_s2 + $0xf8] sm:$0xff] }
  0x23   :  { %v53_v63 = vld [vmem:[%s1283_s1 + $0xf8] sm:$0xff]  ;;  %v69_v0 = vld [vmem:[%s1284_s2 + $0x70] sm:$0xff]  ;;  %v605_v7 = vld [vmem:[%s1285_s3] sm:$0x3] }
  0x24   :  { %843 = vmatmul.mubr.msk.f32.gmra.mrb[16].mxu0 %vm247_vm1, %v39_v35  ;;  %v70_v1 = vld [vmem:[%s1284_s2 + $0x78] sm:$0xff]  ;;  %v616_v9 = vrot.slane %v605_v7, %v615_v6  ;;  %v1194_v10 = vrot.slane %v605_v7, %v611_v8 }
  0x25   :  { %845 = vmatprep.mubr.msk.f32.mxu0 %vm247_vm1, %v40_v36 }
  0x26   :  { %209 = vperm.xlu0 %900, %v79_v37   ;;  %214 = vperm.xlu1 %901, %v80_v38  }
  0x27   :  { %683 = vmatprep.mubr.f32.mxu1 %v616_v9 }
  0x28   :  { %846 = vmatmul.mubr.msk.f32.gmra.mrb[18].mxu0 %vm247_vm1, %v41_v39 }
  0x29   :  { %848 = vmatprep.mubr.msk.f32.mxu0 %vm247_vm1, %v42_v40 }
  0x2a   :  { %129 = vperm.xlu0 %900, %v63_v41   ;;  %134 = vperm.xlu1 %901, %v64_v42  }
  0x2c   :  { %849 = vmatmul.mubr.msk.f32.gmra.mrb[20].mxu0 %vm247_vm1, %v43_v43 }
  0x2d   :  { %851 = vmatprep.mubr.msk.f32.mxu0 %vm247_vm1, %v44_v44 }
  0x2e   :  { %219 = vperm.xlu0 %900, %v81_v45   ;;  %224 = vperm.xlu1 %901, %v82_v46  }
  0x30   :  { %852 = vmatmul.mubr.msk.f32.gmra.mrb[22].mxu0 %vm247_vm1, %v45_v47 }
  0x31   :  { %854 = vmatprep.mubr.msk.f32.mxu0 %vm247_vm1, %v46_v48 }
  0x32   :  { %139 = vperm.xlu0 %900, %v65_v49   ;;  %144 = vperm.xlu1 %901, %v66_v50  }
  0x34   :  { %855 = vmatmul.mubr.msk.f32.gmra.mrb[24].mxu0 %vm247_vm1, %v47_v51 }
  0x35   :  { %857 = vmatprep.mubr.msk.f32.mxu0 %vm247_vm1, %v48_v52 }
  0x36   :  { %229 = vperm.xlu0 %900, %v83_v53   ;;  %234 = vperm.xlu1 %901, %v84_v54  }
  0x38   :  { %858 = vmatmul.mubr.msk.f32.gmra.mrb[26].mxu0 %vm247_vm1, %v49_v55 }
  0x39   :  { %860 = vmatprep.mubr.msk.f32.mxu0 %vm247_vm1, %v50_v56 }
  0x3a   :  { %149 = vperm.xlu0 %900, %v67_v57   ;;  %154 = vperm.xlu1 %901, %v68_v58  }
  0x3c   :  { %861 = vmatmul.mubr.msk.f32.gmra.mrb[28].mxu0 %vm247_vm1, %v51_v59 }
  0x3d   :  { %863 = vmatprep.mubr.msk.f32.mxu0 %vm247_vm1, %v52_v60 }
  0x3e   :  { %239 = vperm.xlu0 %900, %v85_v61   ;;  %244 = vperm.xlu1 %901, %v86_v62  }
  0x40   :  { %864 = vmatmul.mubr.msk.f32.gmra.mrb[30].mxu0 %vm247_vm1, %v53_v63 }
  0x42   :  { %159 = vperm.xlu0 %900, %v69_v0   ;;  %164 = vperm.xlu1 %901, %v70_v1  }
  0x84   :  { %v1189_v5 = vpop.permute.xlu0 %169 }
  0x85   :  { %v90_v4 = vpop.permute.xlu1 %89 }
  0x88   :  { %v1196_v12 = vpop.permute.xlu0 %174 }
  0x89   :  { %v95_v11 = vpop.permute.xlu1 %94 }
  0x8c   :  { %v1200_v14 = vpop.permute.xlu0 %179 }
  0x8d   :  { %v1198_v13 = vpop.permute.xlu1 %184 }
  0x90   :  { %v100_v16 = vpop.permute.xlu0 %99 }
  0x91   :  { %v105_v15 = vpop.permute.xlu1 %104 }
  0x95   :  { %v1202_v17 = vpop.permute.xlu1 %194  ;;  %v1204_v18 = vpop.permute.xlu0 %189 }
  0x99   :  { %v115_v19 = vpop.permute.xlu1 %114  ;;  %v110_v20 = vpop.permute.xlu0 %109 }
  0x9d   :  { %v1206_v21 = vpop.permute.xlu1 %204  ;;  %v1208_v22 = vpop.permute.xlu0 %199 }
  0xa1   :  { %v125_v23 = vpop.permute.xlu1 %124  ;;  %v120_v24 = vpop.permute.xlu0 %119 }
  0xa5   :  { %v1210_v25 = vpop.permute.xlu1 %214  ;;  %v1212_v26 = vpop.permute.xlu0 %209 }
  0xa9   :  { %v135_v27 = vpop.permute.xlu1 %134  ;;  %v130_v28 = vpop.permute.xlu0 %129 }
  0xad   :  { %v1214_v29 = vpop.permute.xlu1 %224  ;;  %v1216_v30 = vpop.permute.xlu0 %219 }
  0xb1   :  { %v145_v36 = vpop.permute.xlu1 %144  ;;  %v140_v39 = vpop.permute.xlu0 %139 }
  0xb5   :  { %v1220_v49 = vpop.permute.xlu1 %234  ;;  %v1224_v52 = vpop.permute.xlu0 %229 }
  0xb9   :  { %v155_v61 = vpop.permute.xlu1 %154  ;;  %v150_v0 = vpop.permute.xlu0 %149 }
  0xd7   :  { %v820_v31 = vpop.f32.mrb[0].mxu0 }
  0xd8   :  { %v420_v32 = vadd.f32 %v820_v31, %v95_v11  ;;  %v414_v33 = vpop.f32.mrb[1].mxu0 }
  0xd9   :  { %v415_v34 = vadd.f32 %v414_v33, %v90_v4 }
  0xda   :  { %v574_v35 = vmax.f32 %v420_v32, 0.0 }
  0xdb   :  { %v573_v37 = vmax.f32 %v415_v34, 0.0  ;;  %v823_v38 = vpop.f32.mrb[2].mxu0 }
  0xdc   :  { %v430_v40 = vadd.f32 %v823_v38, %v105_v15  ;;  %v424_v41 = vpop.f32.mrb[3].mxu0  ;;  %v1230_v15 = vpop.permute.xlu1 %244 }
  0xdd   :  { %v425_v42 = vadd.f32 %v424_v41, %v100_v16  ;;  %v1218_v43 = vpack.c.bf16 %v574_v35, %v573_v37 }
  0xde   :  { %v576_v44 = vmax.f32 %v430_v40, 0.0 }
  0xdf   :  { %v575_v45 = vmax.f32 %v425_v42, 0.0  ;;  %v826_v46 = vpop.f32.mrb[4].mxu0 }
  0xe0   :  { %v440_v47 = vadd.f32 %v826_v46, %v115_v19  ;;  %v434_v48 = vpop.f32.mrb[5].mxu0  ;;  %v165_v35 = vpop.permute.xlu1 %164 }
  0xe1   :  { %v1222_v50 = vpack.c.bf16 %v576_v44, %v575_v45  ;;  %v435_v51 = vadd.f32 %v434_v48, %v110_v20  ;;  %v1234_v20 = vpop.permute.xlu0 %239 }
  0xe2   :  { %v578_v53 = vmax.f32 %v440_v47, 0.0 }
  0xe3   :  { %v577_v54 = vmax.f32 %v435_v51, 0.0  ;;  %v829_v55 = vpop.f32.mrb[6].mxu0 }
  0xe4   :  { %v450_v56 = vadd.f32 %v829_v55, %v125_v23  ;;  %v444_v57 = vpop.f32.mrb[7].mxu0 }
  0xe5   :  { %v1226_v58 = vpack.c.bf16 %v578_v53, %v577_v54  ;;  %v445_v59 = vadd.f32 %v444_v57, %v120_v24  ;;  %v160_v38 = vpop.permute.xlu0 %159 }
  0xe6   :  { %v580_v60 = vmax.f32 %v450_v56, 0.0 }
  0xe7   :  { %v579_v62 = vmax.f32 %v445_v59, 0.0  ;;  %v832_v63 = vpop.f32.mrb[8].mxu0 }
  0xe8   :  { %v460_v1 = vadd.f32 %v832_v63, %v135_v27  ;;  %v454_v2 = vpop.f32.mrb[9].mxu0 }
  0xe9   :  { %v1228_v3 = vpack.c.bf16 %v580_v60, %v579_v62  ;;  %v455_v4 = vadd.f32 %v454_v2, %v130_v28 }
  0xea   :  { %v582_v6 = vmax.f32 %v460_v1, 0.0 }
  0xeb   :  { %v581_v7 = vmax.f32 %v455_v4, 0.0  ;;  %v835_v8 = vpop.f32.mrb[10].mxu0 }
  0xec   :  { %v470_v9 = vadd.f32 %v835_v8, %v145_v36  ;;  %v464_v11 = vpop.f32.mrb[11].mxu0 }
  0xed   :  { %v1232_v16 = vpack.c.bf16 %v582_v6, %v581_v7  ;;  %v465_v19 = vadd.f32 %v464_v11, %v140_v39 }
  0xee   :  { %v584_v23 = vmax.f32 %v470_v9, 0.0 }
  0xef   :  { %v583_v24 = vmax.f32 %v465_v19, 0.0  ;;  %v838_v31 = vpop.f32.mrb[12].mxu0 }
  0xf0   :  { %v480_v27 = vadd.f32 %v838_v31, %v155_v61  ;;  %v474_v32 = vpop.f32.mrb[13].mxu0 }
  0xf1   :  { %v1236_v33 = vpack.c.bf16 %v584_v23, %v583_v24  ;;  %v475_v28 = vadd.f32 %v474_v32, %v150_v0 }
  0xf2   :  { %v586_v34 = vmax.f32 %v480_v27, 0.0 }
  0xf3   :  { %v585_v37 = vmax.f32 %v475_v28, 0.0  ;;  %v841_v36 = vpop.f32.mrb[14].mxu0 }
  0xf4   :  { %v490_v40 = vadd.f32 %v841_v36, %v165_v35  ;;  %v484_v41 = vpop.f32.mrb[15].mxu0 }
  0xf5   :  { %v1238_v42 = vpack.c.bf16 %v586_v34, %v585_v37  ;;  %v485_v39 = vadd.f32 %v484_v41, %v160_v38 }
  0xf6   :  { %v588_v44 = vmax.f32 %v490_v40, 0.0 }
  0xf7   :  { %v587_v45 = vmax.f32 %v485_v39, 0.0  ;;  %v844_v46 = vpop.f32.mrb[16].mxu0 }
  0xf8   :  { %v500_v47 = vadd.f32 %v844_v46, %v1196_v12  ;;  %v494_v48 = vpop.f32.mrb[17].mxu0 }
  0xf9   :  { %v1241_v51 = vpack.c.bf16 %v588_v44, %v587_v45  ;;  %v495_v53 = vadd.f32 %v494_v48, %v1189_v5 }
  0xfa   :  { %v590_v54 = vmax.f32 %v500_v47, 0.0 }
  0xfb   :  { %v589_v55 = vmax.f32 %v495_v53, 0.0  ;;  %v847_v56 = vpop.f32.mrb[18].mxu0 }
  0xfc   :  { %v510_v57 = vadd.f32 %v847_v56, %v1198_v13  ;;  %v504_v59 = vpop.f32.mrb[19].mxu0 }
  0xfd   :  { %v505_v60 = vadd.f32 %v504_v59, %v1200_v14  ;;  %v866_v61 = vpack.c.bf16 %v590_v54, %v589_v55 }
  0xfe   :  { %v592_v62 = vmax.f32 %v510_v57, 0.0 }
  0xff   :  { %v591_v63 = vmax.f32 %v505_v60, 0.0  ;;  %v850_v0 = vpop.f32.mrb[20].mxu0  ;;  %867 = vmatprep.subr.bf16.mxu1 %v866_v61 }
 0x100   :  { %v520_v12 = vadd.f32 %v850_v0, %v1202_v17  ;;  %v514_v1 = vpop.f32.mrb[21].mxu0  ;;  %869 = vmatpush3.bf16.msra.mxu1 %v1218_v43 }
 0x101   :  { %v870_v2 = vpack.c.bf16 %v592_v62, %v591_v63  ;;  %v515_v5 = vadd.f32 %v514_v1, %v1204_v18 }
 0x102   :  { %v594_v4 = vmax.f32 %v520_v12, 0.0 }
 0x103   :  { %v593_v6 = vmax.f32 %v515_v5, 0.0  ;;  %v853_v7 = vpop.f32.mrb[22].mxu0  ;;  %871 = vmatprep.subr.bf16.mxu1 %v870_v2 }
 0x104   :  { %v530_v13 = vadd.f32 %v853_v7, %v1206_v21  ;;  %v524_v14 = vpop.f32.mrb[23].mxu0  ;;  %873 = vmatpush3.bf16.msra.mxu1 %v1222_v50 }
 0x105   :  { %v874_v8 = vpack.c.bf16 %v594_v4, %v593_v6  ;;  %v525_v9 = vadd.f32 %v524_v14, %v1208_v22 }
 0x106   :  { %v596_v11 = vmax.f32 %v530_v13, 0.0 }
 0x107   :  { %v595_v17 = vmax.f32 %v525_v9, 0.0  ;;  %v856_v19 = vpop.f32.mrb[24].mxu0  ;;  %875 = vmatprep.subr.bf16.mxu1 %v874_v8 }
 0x108   :  { %v540_v43 = vadd.f32 %v856_v19, %v1210_v25  ;;  %v534_v23 = vpop.f32.mrb[25].mxu0  ;;  %877 = vmatpush3.bf16.msra.mxu1 %v1226_v58 }
 0x109   :  { %v878_v18 = vpack.c.bf16 %v596_v11, %v595_v17  ;;  %v535_v24 = vadd.f32 %v534_v23, %v1212_v26 }
 0x10a   :  { %v598_v31 = vmax.f32 %v540_v43, 0.0 }
 0x10b   :  { %v597_v21 = vmax.f32 %v535_v24, 0.0  ;;  %v859_v27 = vpop.f32.mrb[26].mxu0  ;;  %879 = vmatprep.subr.bf16.mxu1 %v878_v18 }
 0x10c   :  { %v550_v50 = vadd.f32 %v859_v27, %v1214_v29  ;;  %v544_v32 = vpop.f32.mrb[27].mxu0  ;;  %881 = vmatpush3.bf16.msra.mxu1 %v1228_v3 }
 0x10d   :  { %v882_v22 = vpack.c.bf16 %v598_v31, %v597_v21  ;;  %v545_v28 = vadd.f32 %v544_v32, %v1216_v30 }
 0x10e   :  { %v600_v34 = vmax.f32 %v550_v50, 0.0 }
 0x10f   :  { %v599_v25 = vmax.f32 %v545_v28, 0.0  ;;  %v862_v35 = vpop.f32.mrb[28].mxu0  ;;  %883 = vmatprep.subr.bf16.mxu1 %v882_v22 }
 0x110   :  { %v560_v58 = vadd.f32 %v862_v35, %v1220_v49  ;;  %v554_v37 = vpop.f32.mrb[29].mxu0  ;;  %885 = vmatpush3.bf16.msra.mxu1 %v1232_v16 }
 0x111   :  { %v886_v26 = vpack.c.bf16 %v600_v34, %v599_v25  ;;  %v555_v36 = vadd.f32 %v554_v37, %v1224_v52 }
 0x112   :  { %v602_v38 = vmax.f32 %v560_v58, 0.0 }
 0x113   :  { %v601_v29 = vmax.f32 %v555_v36, 0.0  ;;  %v865_v40 = vpop.f32.mrb[30].mxu0  ;;  %887 = vmatprep.subr.bf16.mxu1 %v886_v26 }
 0x114   :  { %v570_v3 = vadd.f32 %v865_v40, %v1230_v15  ;;  %v564_v41 = vpop.f32.mrb[31].mxu0  ;;  %889 = vmatpush3.bf16.msra.mxu1 %v1236_v33  ;;  %v607_v15 = vstv %s1286_s4 }
 0x115   :  { %v890_v30 = vpack.c.bf16 %v602_v38, %v601_v29  ;;  %v565_v39 = vadd.f32 %v564_v41, %v1234_v20 }
 0x116   :  { %v604_v44 = vmax.f32 %v570_v3, 0.0 }
 0x117   :  { %v603_v49 = vmax.f32 %v565_v39, 0.0  ;;  %891 = vmatprep.subr.bf16.mxu1 %v890_v30 }
 0x118   :  { %893 = vmatpush3.bf16.msra.mxu1 %v1238_v42 }
 0x119   :  { %v894_v16 = vpack.c.bf16 %v604_v44, %v603_v49 }
 0x11b   :  { %895 = vmatprep.subr.bf16.mxu1 %v894_v16 }
 0x11c   :  { %897 = vmatpush3.bf16.msra.mxu1 %v1241_v51 }
 0x11f   :  { %684 = vmatmul.mubr.f32.vlgmr.msra.gmra.mrb[0].mxu1 %v1194_v10 }
 0x1f2   :  { %v813_v52 = vpop.f32.mrb[0].mxu1 }
 0x1f3   :  { %v814_v33 = vpop.f32.mrb[1].mxu1 }
 0x1f4   :  { %v815_v45 = vadd.f32 %v814_v33, %v813_v52 }
 0x1f6   :  { %v686_v46 = vadd.f32 %v815_v45, %v607_v15 }
 0x1f8   :  { %v689_v20 = vsub.f32 0.0, %v686_v46 }
 0x1fa   :  { %v690_v47 = vmul.f32 1.442695, %v689_v20 }
 0x1fc   :  { %902 = vpow2.f32 %v690_v47 }
 0x206   :  { %v903_v48 = vpop.eup %902 }
 0x207   :  { %v692_v53 = vadd.f32 1.0, %v903_v48 }
 0x209   :  { %904 = vrcp.f32 %v692_v53 }
 0x213   :  { %v905_v42 = vpop.eup %904 }
 0x214   :  { %v694_v54 = vsub.f32 1.0, %v905_v42 }
 0x216   :  { %v696_v10 = vrot.slane %v694_v54, 7 }
 0x218   :  { %v699_v51 = vsel %vm698_vm2, %v905_v42, %v696_v10 }
 0x219   :  { %700 = vst [vmem:[#allocation3] sm:$0x3] %v699_v51 }
 0x21a   :  { %917 = shalt.err (!%p914_p4)
}
 0x21b   :  { %s918_s23 = scalar_lea.hbm %s1287_s5, 32 }
 0x21c   :  { %p919_p5 = scmp.ne.s32.totalorder %s1287_s5, %s918_s23  ;;  %p922_p6 = scmp.lt.u32.totalorder %s918_s23, %s1287_s5 }
 0x21e   :  { %p924_p7 = pnand %p922_p6, %p919_p5 }
 0x220   :  { %927 = shalt.err (!%p924_p7)
}
 0x221   :  { %710 = dma.vmem_to_hbm [thread:$0]  %s708_s20, 32, %s1287_s5, [#allocation4]  }
 0x222   :  { %928 = dma.done.wait [#allocation4], 32  }
 0x223   :  { %929 = vsyncadd [#allocation4], 4294967264 }
 0x224   :  { %714 = vsyncpa [#allocation4], 1 }

</bundles_post_ra>
